<compile_context>
chip_gen: v6e
topology: v6e:2x2x1
jax: 0.10.0
libtpu: 0.0.40
codegen_flags: <defaults>
</compile_context>

<pallas_src>
import numpy as np
import jax
import jax.numpy as jnp
from jax.experimental import pallas as pl
from jax.experimental.pallas import tpu as pltpu


def _round_up(x, m):
    return ((x + m - 1) // m) * m


# ----------------------------------------------------------------------------
# Kernel: per (i, j) output tile, reduce over K grid axis into a VMEM scratch
# accumulator; fuse per-tile base+delta add; bias add + cast on the last K step.
# ----------------------------------------------------------------------------
def sparse_linear_kernel(x_ref, wb_ref, wd_ref, b_ref, o_ref, acc_ref):
    k = pl.program_id(2)

    @pl.when(k == 0)
    def _():
        acc_ref[...] = jnp.zeros_like(acc_ref)

    # csr_add equivalent on this (tk, tn) weight tile: W_eff = base + sparse delta
    # (VPU add is free filler under the MXU-bound matmul).
    w_eff = wb_ref[...] + wd_ref[...]
    # sp_mm equivalent: (tm, tk) @ (tk, tn), f32 accumulation on the MXU.
    acc_ref[...] += jnp.dot(x_ref[...], w_eff, preferred_element_type=jnp.float32)

    @pl.when(k == pl.num_programs(2) - 1)
    def _():
        o_ref[...] = (acc_ref[...] + b_ref[...]).astype(o_ref.dtype)


def sparse_linear_forward(x, base_weight, sparse_delta_dense, bias,
                          *, tm=256, tn=256, tk=512):
    """x: (..., K); base_weight / sparse_delta_dense: (N, K); bias: (N,)."""
    orig_lead = x.shape[:-1]
    N, K = base_weight.shape
    x2d = x.reshape(-1, K)
    M = x2d.shape[0]

    # Clamp tiles to the (padded) problem size while keeping layout alignment:
    # sublane dims multiples of 8, lane dims multiples of 128.
    tm = min(tm, _round_up(M, 8))
    tn = min(tn, _round_up(N, 128))
    tk = min(tk, _round_up(K, 128))
    Mp, Np, Kp = _round_up(M, tm), _round_up(N, tn), _round_up(K, tk)

    # Pre-transpose the weights once outside the kernel (static / one XLA op) so
    # the kernel contracts directly over K with a lane-dense (N on lanes) output.
    wb_t = jnp.pad(base_weight.T, ((0, Kp - K), (0, Np - N)))
    wd_t = jnp.pad(sparse_delta_dense.T, ((0, Kp - K), (0, Np - N)))
    xp = jnp.pad(x2d, ((0, Mp - M), (0, Kp - K)))
    bp = jnp.pad(bias.reshape(1, N), ((0, 0), (0, Np - N)))

    grid = (Mp // tm, Np // tn, Kp // tk)

    # VMEM footprint: double-buffered input tiles + output tile + f32 accumulator.
    itm = jnp.dtype(xp.dtype).itemsize
    out_itm = jnp.dtype(x.dtype).itemsize
    vmem_bytes = (2 * (tm * tk + 2 * tk * tn + tn) * itm
                  + 2 * tm * tn * out_itm
                  + tm * tn * 4)
    vmem_limit = int(min(128 * 1024 * 1024, max(2 * vmem_bytes, 32 * 1024 * 1024)))

    out = pl.pallas_call(
        sparse_linear_kernel,
        out_shape=jax.ShapeDtypeStruct((Mp, Np), x.dtype),
        grid_spec=pltpu.PrefetchScalarGridSpec(
            num_scalar_prefetch=0,
            grid=grid,
            in_specs=[
                pl.BlockSpec((tm, tk), lambda i, j, k: (i, k)),   # x tile
                pl.BlockSpec((tk, tn), lambda i, j, k: (k, j)),   # base weight (K,N) tile
                pl.BlockSpec((tk, tn), lambda i, j, k: (k, j)),   # sparse delta (K,N) tile
                pl.BlockSpec((1, tn), lambda i, j, k: (0, j)),    # bias tile (resident over k)
            ],
            out_specs=pl.BlockSpec((tm, tn), lambda i, j, k: (i, j)),
            scratch_shapes=[pltpu.VMEM((tm, tn), jnp.float32)],
        ),
        compiler_params=pltpu.CompilerParams(
            dimension_semantics=("parallel", "parallel", "arbitrary"),
            vmem_limit_bytes=vmem_limit,
        ),
    )(xp, wb_t, wd_t, bp)

    out = out[:M, :N]
    return out.reshape(*orig_lead, N)


# ----------------------------------------------------------------------------
# Deterministic parameter construction (mirrors SparseWeights.__init__):
#   random binary mask (keep_ratio kept, "regular_sparse"), CSR indices
#   (row_offs int32, col_idx int16, row_idx int16), and CSR data values.
# The CSR -> dense scatter is plain-JAX glue; the add + matmul run in-kernel.
# ----------------------------------------------------------------------------
def build_sparse_params(key, out_features, in_features, keep_ratio=0.5):
    shape = (out_features, in_features)
    nnz = int(keep_ratio * np.prod(shape))

    k_mask, k_vals = jax.random.split(key)
    scores = np.asarray(jax.random.uniform(k_mask, shape)).reshape(-1)
    keep_flat_idx = np.argsort(-scores)[:nnz]
    mask = np.zeros(np.prod(shape), dtype=np.float32)
    mask[keep_flat_idx] = 1.0
    mask = mask.reshape(shape)

    # CSR representation (row-major, as scipy.csr_matrix would produce)
    rows, cols = np.nonzero(mask)
    row_counts = np.bincount(rows, minlength=out_features)
    row_offs = np.zeros(out_features + 1, dtype=np.int32)
    row_offs[1:] = np.cumsum(row_counts)
    col_idx = cols.astype(np.int16)
    row_idx = np.argsort(-row_counts, kind="stable").astype(np.int16)  # bookkeeping only

    # sparse_weights parameter values (the CSR .data vector); the module inits
    # them to zeros -- use deterministic non-zero values so the delta is non-trivial.
    sparse_vals = jax.random.normal(k_vals, (nnz,), dtype=jnp.float32) * 0.02

    delta = jnp.zeros(shape, dtype=jnp.float32).at[rows, cols].set(sparse_vals)
    return delta, (row_offs, row_idx, col_idx, sparse_vals)


if __name__ == "__main__":
    key = jax.random.PRNGKey(0)
    k_x, k_w, k_b, k_sp = jax.random.split(key, 4)

    batch, seq = 2, 8
    in_features, out_features = 32, 32

    # inputs and frozen base linear parameters (deterministic)
    x = jax.random.normal(k_x, (batch, seq, in_features), dtype=jnp.float32)
    base_weight = jax.random.normal(k_w, (out_features, in_features), dtype=jnp.float32) * 0.1
    base_bias = jax.random.normal(k_b, (out_features,), dtype=jnp.float32) * 0.1

    # sparse delta (keep_ratio=0.5, 'regular_sparse' path of SparseLinearFunction_SP_ADD)
    sparse_delta, _csr = build_sparse_params(k_sp, out_features, in_features, keep_ratio=0.5)

    # TODO(synk): use_sparse_bias=False (module default); sparse_bias add omitted.

    y = sparse_linear_forward(x, base_weight, sparse_delta, base_bias)
    y = jax.block_until_ready(y)

    # reference check against plain JAX
    y_ref = x @ (base_weight + sparse_delta).T + base_bias
    np.testing.assert_allclose(np.asarray(y), np.asarray(y_ref), rtol=1e-5, atol=1e-5)

    print("KERNEL_OK")
</pallas_src>

<mosaic_0001>
module attributes {stable_mosaic.version = 11 : i64} {
  func.func @sparse_linear_kernel(%arg0: i32, %arg1: i32, %arg2: i32, %arg3: memref<16x128xf32, #tpu.memory_space<vmem>>, %arg4: memref<128x128xf32, #tpu.memory_space<vmem>>, %arg5: memref<128x128xf32, #tpu.memory_space<vmem>>, %arg6: memref<1x128xf32, #tpu.memory_space<vmem>>, %arg7: memref<16x128xf32, #tpu.memory_space<vmem>>, %arg8: memref<16x128xf32, #tpu.memory_space<vmem>>) attributes {dimension_semantics = [#tpu.dimension_semantics<parallel>, #tpu.dimension_semantics<parallel>, #tpu.dimension_semantics<arbitrary>], iteration_bounds = array<i64: 1, 1, 1>, scalar_prefetch = 0 : i64, scratch_operands = 1 : i64, tpu.core_type = #tpu.core_type<tc>, window_params = [{transform_indices = @transform_0, window_bounds = array<i64: 16, 128>}, {transform_indices = @transform_1, window_bounds = array<i64: 128, 128>}, {transform_indices = @transform_2, window_bounds = array<i64: 128, 128>}, {transform_indices = @transform_3, window_bounds = array<i64: 1, 128>}, {transform_indices = @transform_4, window_bounds = array<i64: 16, 128>}]} {
    %c0_i32 = arith.constant 0 : i32
    %0 = arith.cmpi eq, %arg2, %c0_i32 : i32
    %1 = arith.extui %0 : i1 to i32
    %c0_i32_0 = arith.constant 0 : i32
    %2 = arith.cmpi ne, %1, %c0_i32_0 : i32
    scf.if %2 {
      %cst_12 = arith.constant 0.000000e+00 : f32
      %14 = vector.broadcast %cst_12 : f32 to vector<16x128xf32>
      %c0_13 = arith.constant 0 : index
      %c0_14 = arith.constant 0 : index
      %15 = vector.load %arg8[%c0_13, %c0_14] : memref<16x128xf32, #tpu.memory_space<vmem>>, vector<16x128xf32>
      tpu.vector_store %arg8[%c0_13, %c0_14], %14 {strides = array<i32>} : memref<16x128xf32, #tpu.memory_space<vmem>>, vector<16x128xf32>,
    } else {
    }
    %c0 = arith.constant 0 : index
    %c0_1 = arith.constant 0 : index
    %3 = vector.load %arg4[%c0, %c0_1] : memref<128x128xf32, #tpu.memory_space<vmem>>, vector<128x128xf32>
    %c0_2 = arith.constant 0 : index
    %c0_3 = arith.constant 0 : index
    %4 = vector.load %arg5[%c0_2, %c0_3] : memref<128x128xf32, #tpu.memory_space<vmem>>, vector<128x128xf32>
    %5 = arith.addf %3, %4 : vector<128x128xf32>
    %c0_4 = arith.constant 0 : index
    %c0_5 = arith.constant 0 : index
    %6 = vector.load %arg8[%c0_4, %c0_5] : memref<16x128xf32, #tpu.memory_space<vmem>>, vector<16x128xf32>
    %c0_6 = arith.constant 0 : index
    %c0_7 = arith.constant 0 : index
    %7 = vector.load %arg3[%c0_6, %c0_7] : memref<16x128xf32, #tpu.memory_space<vmem>>, vector<16x128xf32>
    %cst = arith.constant dense<0.000000e+00> : vector<16x128xf32>
    %8 = tpu.matmul %7, %5, %cst {dimension_numbers = #tpu.dot_dimension_numbers<[1], [0], [0], [1], [0, 0, 1, 1], [], []>} : vector<16x128xf32>, vector<128x128xf32>, vector<16x128xf32> -> vector<16x128xf32>
    %9 = arith.addf %6, %8 : vector<16x128xf32>
    %c0_8 = arith.constant 0 : index
    %c0_9 = arith.constant 0 : index
    %10 = vector.load %arg8[%c0_8, %c0_9] : memref<16x128xf32, #tpu.memory_space<vmem>>, vector<16x128xf32>
    tpu.vector_store %arg8[%c0_8, %c0_9], %9 {strides = array<i32>} : memref<16x128xf32, #tpu.memory_space<vmem>>, vector<16x128xf32>,
    %c0_i32_10 = arith.constant 0 : i32
    %11 = arith.cmpi eq, %arg2, %c0_i32_10 : i32
    %12 = arith.extui %11 : i1 to i32
    %c0_i32_11 = arith.constant 0 : i32
    %13 = arith.cmpi ne, %12, %c0_i32_11 : i32
    scf.if %13 {
      %c0_12 = arith.constant 0 : index
      %c0_13 = arith.constant 0 : index
      %14 = vector.load %arg8[%c0_12, %c0_13] : memref<16x128xf32, #tpu.memory_space<vmem>>, vector<16x128xf32>
      %c0_14 = arith.constant 0 : index
      %c0_15 = arith.constant 0 : index
      %15 = vector.load %arg6[%c0_14, %c0_15] : memref<1x128xf32, #tpu.memory_space<vmem>>, vector<1x128xf32>
      %16 = vector.broadcast %15 : vector<1x128xf32> to vector<16x128xf32>
      %17 = arith.addf %14, %16 : vector<16x128xf32>
      %c0_16 = arith.constant 0 : index
      %c0_17 = arith.constant 0 : index
      %18 = vector.load %arg7[%c0_16, %c0_17] : memref<16x128xf32, #tpu.memory_space<vmem>>, vector<16x128xf32>
      tpu.vector_store %arg7[%c0_16, %c0_17], %17 {strides = array<i32>} : memref<16x128xf32, #tpu.memory_space<vmem>>, vector<16x128xf32>,
    } else {
    }
    return
  }
  func.func @transform_0(%arg0: i32, %arg1: i32, %arg2: i32) -> (i32, i32) {
    %c0_i32 = arith.constant 0 : i32
    return %arg0, %arg2 : i32, i32
  }
  func.func @transform_1(%arg0: i32, %arg1: i32, %arg2: i32) -> (i32, i32) {
    %c0_i32 = arith.constant 0 : i32
    return %arg2, %arg1 : i32, i32
  }
  func.func @transform_2(%arg0: i32, %arg1: i32, %arg2: i32) -> (i32, i32) {
    %c0_i32 = arith.constant 0 : i32
    return %arg2, %arg1 : i32, i32
  }
  func.func @transform_3(%arg0: i32, %arg1: i32, %arg2: i32) -> (i32, i32) {
    %c0_i32 = arith.constant 0 : i32
    %c0_i32_0 = arith.constant 0 : i32
    return %c0_i32, %arg1 : i32, i32
  }
  func.func @transform_4(%arg0: i32, %arg1: i32, %arg2: i32) -> (i32, i32) {
    %c0_i32 = arith.constant 0 : i32
    return %arg0, %arg1 : i32, i32
  }
}

</mosaic_0001>

<bundles_post_ra>
// kernel: tpu_custom_call.1
= control target key start
LH: loop header
LB: loop body
LE: loop exit
PB: predicated region body
PF: predicated region fallthrough
CT: control target
= control target key end

     0   :  { %9 = vsyncpa [#allocation4], 0  ;;  %s434_s0 = inlined_call_operand.hbm [shape: f32[16,128], index: 0, kind: input, shape index: {}]   ;;  %s435_s1 = inlined_call_operand.hbm [shape: f32[128,128], index: 1, kind: input, shape index: {}]   ;;  %s436_s2 = inlined_call_operand.hbm [shape: f32[128,128], index: 2, kind: input, shape index: {}]   ;;  %s437_s3 = inlined_call_operand.vmem [shape: f32[1,128], index: 3, kind: input, shape index: {}]   ;;  %s438_s4 = inlined_call_operand.hbm [shape: f32[16,128], index: 4, kind: output, shape index: {}]  }
   0x1   :  { %10 = vsyncpa [#allocation7], 0 }
   0x2   :  { %11 = vsyncpa [#allocation5], 0  ;;  %s376_s15 = smov [#allocation6]   ;;  %s377_s17 = smov [#allocation3]  }
   0x3   :  { %s29_s16 = sshll.u32 %s376_s15, 4  ;;  %s17_s18 = sshll.u32 %s377_s17, 4  ;;  %s30_s16 = int_to_ptr.vmem [resolvable:$true] %s29_s16  ;;  %s18_s18 = int_to_ptr.vmem [resolvable:$true] %s17_s18 }
   0x4   :  { %s298_s19 = scalar_lea.vmem %s30_s16, 2048  ;;  %p303_p1 = scmp.lt.s32.totalorder %s30_s16, %s30_s16 }
   0x5   :  { %p299_p0 = scmp.ne.s32.totalorder %s30_s16, %s298_s19  ;;  %p304_p2 = scmp.lt.s32.totalorder %s298_s19, %s298_s19 }
   0x7   :  { %p305_p3 = por %p304_p2, %p303_p1 }
   0x9   :  { %p306_p4 = pnand %p305_p3, %p299_p0 }
   0xb   :  { %309 = shalt.err (!%p306_p4)
}
   0xc   :  { %s378_s20 = smov 128   ;;  %s379_s21 = smov 8  }
   0xd   :  { %35 = dma.hbm_to_vmem [thread:$0]  %s435_s1, 2048, %s30_s16, [#allocation7], %s378_s20, %s378_s20, %s379_s21  }
   0xe   :  { %s318_s24 = scalar_lea.vmem %s18_s18, 256  ;;  %p323_p6 = scmp.lt.s32.totalorder %s18_s18, %s18_s18 }
   0xf   :  { %p319_p5 = scmp.ne.s32.totalorder %s18_s18, %s318_s24  ;;  %p324_p7 = scmp.lt.s32.totalorder %s318_s24, %s318_s24 }
  0x11   :  { %p325_p8 = por %p324_p7, %p323_p6 }
  0x13   :  { %p326_p9 = pnand %p325_p8, %p319_p5 }
  0x15   :  { %329 = shalt.err (!%p326_p9)
}
  0x16   :  { %23 = dma.hbm_to_vmem [thread:$0]  %s434_s0, 256, %s18_s18, [#allocation4], %s378_s20, %s378_s20, %s379_s21  }
  0x17   :  { %s380_s27 = smov [#allocation8]  }
  0x18   :  { %s41_s28 = sshll.u32 %s380_s27, 4  ;;  %s42_s28 = int_to_ptr.vmem [resolvable:$true] %s41_s28 }
  0x19   :  { %s338_s29 = scalar_lea.vmem %s42_s28, 2048  ;;  %p343_p11 = scmp.lt.s32.totalorder %s42_s28, %s42_s28 }
  0x1a   :  { %p339_p10 = scmp.ne.s32.totalorder %s42_s28, %s338_s29  ;;  %p344_p12 = scmp.lt.s32.totalorder %s338_s29, %s338_s29 }
  0x1c   :  { %p345_p13 = por %p344_p12, %p343_p11 }
  0x1e   :  { %p346_p0 = pnand %p345_p13, %p339_p10 }
  0x20   :  { %349 = shalt.err (!%p346_p0)
}
  0x21   :  { %47 = dma.hbm_to_vmem [thread:$0]  %s436_s2, 2048, %s42_s28, [#allocation7], %s378_s20, %s378_s20, %s379_s21  }
  0x22   :  { %370 = dma.done.wait [#allocation4], 256  }
  0x23   :  { %371 = vsyncadd [#allocation4], 4294967040 }
  0x24   :  { %372 = dma.done.wait [#allocation7], 4096  }
  0x25   :  { %373 = vsyncadd [#allocation7], 4294963200  ;;  %v80_v0 = vld [vmem:[#allocation6 + $0x78] sm:$0xff]  ;;  %v79_v2 = vld [vmem:[#allocation6 + $0x70] sm:$0xff]  ;;  %s381_s5 = smov [#allocation9]  }
  0x26   :  { %v96_v1 = vld [vmem:[#allocation8 + $0x78] sm:$0xff]  ;;  %v95_v4 = vld [vmem:[#allocation8 + $0x70] sm:$0xff]  ;;  %v78_v5 = vld [vmem:[#allocation6 + $0x68] sm:$0xff]  ;;  %s217_s6 = sshll.u32 %s381_s5, 4  ;;  %s218_s6 = int_to_ptr.vmem [resolvable:$true] %s217_s6 }
  0x27   :  { %v112_v3 = vadd.f32 %v96_v1, %v80_v0  ;;  %v94_v6 = vld [vmem:[#allocation8 + $0x68] sm:$0xff]  ;;  %v111_v7 = vadd.f32 %v95_v4, %v79_v2  ;;  %v77_v8 = vld [vmem:[#allocation6 + $0x60] sm:$0xff]  ;;  %v76_v11 = vld [vmem:[#allocation6 + $0x58] sm:$0xff]  ;;  %s350_s7 = scalar_lea.vmem %s218_s6, 256  ;;  %p355_p2 = scmp.lt.s32.totalorder %s218_s6, %s218_s6 }
  0x28   :  { %v93_v9 = vld [vmem:[#allocation8 + $0x60] sm:$0xff]  ;;  %v110_v10 = vadd.f32 %v94_v6, %v78_v5  ;;  %v92_v12 = vld [vmem:[#allocation8 + $0x58] sm:$0xff]  ;;  %v75_v14 = vld [vmem:[#allocation6 + $0x50] sm:$0xff]  ;;  %p351_p1 = scmp.ne.s32.totalorder %s218_s6, %s350_s7  ;;  %p356_p3 = scmp.lt.s32.totalorder %s350_s7, %s350_s7 }
  0x29   :  { %249 = vmatprep.subr.mxu0 %v112_v3  ;;  %v109_v13 = vadd.f32 %v93_v9, %v77_v8  ;;  %v91_v15 = vld [vmem:[#allocation8 + $0x50] sm:$0xff]  ;;  %v108_v16 = vadd.f32 %v92_v12, %v76_v11  ;;  %v74_v17 = vld [vmem:[#allocation6 + $0x48] sm:$0xff]  ;;  %v73_v20 = vld [vmem:[#allocation6 + $0x40] sm:$0xff] }
  0x2a   :  { %250 = vmatpush3.msra.mxu0 %v112_v3  ;;  %v90_v18 = vld [vmem:[#allocation8 + $0x48] sm:$0xff]  ;;  %v107_v19 = vadd.f32 %v91_v15, %v75_v14  ;;  %v89_v21 = vld [vmem:[#allocation8 + $0x40] sm:$0xff]  ;;  %v115_v22 = vld [vmem:[#allocation3] sm:$0xff]  ;;  %p357_p4 = por %p356_p3, %p355_p2 }
  0x2b   :  { %251 = vmatprep.subr.mxu0 %v111_v7  ;;  %v106_v23 = vadd.f32 %v90_v18, %v74_v17  ;;  %281 = vmatprep.mubr.f32.mxu0 %v115_v22  ;;  %v72_v24 = vld [vmem:[#allocation6 + $0x38] sm:$0xff]  ;;  %v105_v26 = vadd.f32 %v89_v21, %v73_v20  ;;  %v71_v27 = vld [vmem:[#allocation6 + $0x30] sm:$0xff]  ;;  %v70_v30 = vld [vmem:[#allocation6 + $0x28] sm:$0xff] }
  0x2c   :  { %252 = vmatpush3.msra.mxu0 %v111_v7  ;;  %v88_v25 = vld [vmem:[#allocation8 + $0x38] sm:$0xff]  ;;  %v87_v28 = vld [vmem:[#allocation8 + $0x30] sm:$0xff]  ;;  %v86_v31 = vld [vmem:[#allocation8 + $0x28] sm:$0xff]  ;;  %p358_p5 = pnand %p357_p4, %p351_p1 }
  0x2d   :  { %253 = vmatprep.subr.mxu0 %v110_v10  ;;  %v104_v29 = vadd.f32 %v88_v25, %v72_v24  ;;  %v103_v32 = vadd.f32 %v87_v28, %v71_v27  ;;  %v69_v33 = vld [vmem:[#allocation6 + $0x20] sm:$0xff]  ;;  %v102_v35 = vadd.f32 %v86_v31, %v70_v30  ;;  %v68_v36 = vld [vmem:[#allocation6 + $0x18] sm:$0xff]  ;;  %v67_v39 = vld [vmem:[#allocation6 + $0x10] sm:$0xff] }
  0x2e   :  { %254 = vmatpush3.msra.mxu0 %v110_v10  ;;  %v85_v34 = vld [vmem:[#allocation8 + $0x20] sm:$0xff]  ;;  %v84_v37 = vld [vmem:[#allocation8 + $0x18] sm:$0xff]  ;;  %v83_v40 = vld [vmem:[#allocation8 + $0x10] sm:$0xff] }
  0x2f   :  { %255 = vmatprep.subr.mxu0 %v109_v13  ;;  %v101_v38 = vadd.f32 %v85_v34, %v69_v33  ;;  %v100_v41 = vadd.f32 %v84_v37, %v68_v36  ;;  %v66_v42 = vld [vmem:[#allocation6 + $0x8] sm:$0xff]  ;;  %v99_v44 = vadd.f32 %v83_v40, %v67_v39  ;;  %v65_v45 = vld [vmem:[#allocation6] sm:$0xff]  ;;  %v116_v49 = vld [vmem:[#allocation3 + $0x8] sm:$0xff] }
  0x30   :  { %256 = vmatpush3.msra.mxu0 %v109_v13  ;;  %v82_v43 = vld [vmem:[#allocation8 + $0x8] sm:$0xff]  ;;  %v81_v46 = vld [vmem:[#allocation8] sm:$0xff]  ;;  %v230_v50 = vld [vmem:[%s437_s3] ss:$0 sm:$0xff] }
  0x31   :  { %257 = vmatprep.subr.mxu0 %v108_v16  ;;  %v98_v47 = vadd.f32 %v82_v43, %v66_v42  ;;  %v97_v48 = vadd.f32 %v81_v46, %v65_v45 }
  0x32   :  { %258 = vmatpush3.msra.mxu0 %v108_v16 }
  0x33   :  { %259 = vmatprep.subr.mxu0 %v107_v19 }
  0x34   :  { %260 = vmatpush3.msra.mxu0 %v107_v19 }
  0x35   :  { %261 = vmatprep.subr.mxu0 %v106_v23 }
  0x36   :  { %262 = vmatpush3.msra.mxu0 %v106_v23 }
  0x37   :  { %263 = vmatprep.subr.mxu0 %v105_v26 }
  0x38   :  { %264 = vmatpush3.msra.mxu0 %v105_v26 }
  0x39   :  { %265 = vmatprep.subr.mxu0 %v104_v29 }
  0x3a   :  { %266 = vmatpush3.msra.mxu0 %v104_v29 }
  0x3b   :  { %267 = vmatprep.subr.mxu0 %v103_v32 }
  0x3c   :  { %268 = vmatpush3.msra.mxu0 %v103_v32 }
  0x3d   :  { %269 = vmatprep.subr.mxu0 %v102_v35 }
  0x3e   :  { %270 = vmatpush3.msra.mxu0 %v102_v35 }
  0x3f   :  { %271 = vmatprep.subr.mxu0 %v101_v38 }
  0x40   :  { %272 = vmatpush3.msra.mxu0 %v101_v38 }
  0x41   :  { %273 = vmatprep.subr.mxu0 %v100_v41 }
  0x42   :  { %274 = vmatpush3.msra.mxu0 %v100_v41 }
  0x43   :  { %275 = vmatprep.subr.mxu0 %v99_v44 }
  0x44   :  { %276 = vmatpush3.msra.mxu0 %v99_v44 }
  0x45   :  { %277 = vmatprep.subr.mxu0 %v98_v47 }
  0x46   :  { %278 = vmatpush3.msra.mxu0 %v98_v47 }
  0x47   :  { %279 = vmatprep.subr.mxu0 %v97_v48 }
  0x48   :  { %280 = vmatpush3.msra.mxu0 %v97_v48 }
  0x49   :  { %282 = vmatmul.mubr.f32.vlgmr.msra.gmra.mxu0 %v116_v49 }
 0x109   :  { %v283_v51 = vpop.f32.mrf.mxu0 }
 0x10a   :  { %v209_v52 = vadd.f32 %v283_v51, %v230_v50 }
 0x10b   :  { %v183_v53 = vpop.f32.mrf.mxu0 }
 0x10c   :  { %211 = vst [vmem:[#allocation9 + $0x8] sm:$0xff] %v209_v52  ;;  %v208_v54 = vadd.f32 %v230_v50, %v183_v53 }
 0x10e   :  { %210 = vst [vmem:[#allocation9] sm:$0xff] %v208_v54 }
 0x10f   :  { %361 = shalt.err (!%p358_p5)
}
 0x110   :  { %223 = dma.vmem_to_hbm [thread:$0]  %s218_s6, 256, %s438_s4, [#allocation5], %s378_s20, %s378_s20, %s379_s21  }
 0x111   :  { %374 = dma.done.wait [#allocation5], 256  }
 0x112   :  { %375 = vsyncadd [#allocation5], 4294967040 }
 0x113   :  { %227 = vsyncpa [#allocation4], 1 }
 0x114   :  { %228 = vsyncpa [#allocation7], 1 }
 0x115   :  { %229 = vsyncpa [#allocation5], 1 }

</bundles_post_ra>
